<compile_context>
chip_gen: v5e
topology: v5e:2x2
jax: 0.10.0
libtpu: 0.0.40
codegen_flags: <defaults>
</compile_context>

<pallas_src>
import jax
import jax.numpy as jnp
from jax.experimental import pallas as pl
from jax.experimental.pallas import tpu as pltpu

_LANES = 128      # lane width: batch elements per vreg row
_SUBCHUNK = 16    # sublane rows processed per inner-loop iteration
_EPS = 1e-5       # PyTorch LayerNorm default eps


def _round_up(n, m):
    return ((n + m - 1) // m) * m


def pidnn_kernel(x_ref, a_ref, c_ref, w2_ref, b2_ref, o_ref):
    # x_ref: (2, BR, 128) VMEM block -- batch on (sublane, lane)
    # o_ref: (3, BR, 128) VMEM block
    # a_ref/c_ref: (10,) folded LN-affine+fc1 params, w2_ref: (30,) row-major
    # (3,10), b2_ref: (3,)  -- all small f32 arrays resident in SMEM.
    br = x_ref.shape[1]
    n_chunks = br // _SUBCHUNK

    # Hoist all scalar parameter reads out of the inner loop (read once per
    # grid step; the scalar path has plenty of slack).
    a = [a_ref[j] for j in range(10)]
    c = [c_ref[j] for j in range(10)]
    w2 = [w2_ref[i] for i in range(30)]
    b2 = [b2_ref[k] for k in range(3)]

    @pl.loop(0, n_chunks)
    def _(ci):
        r0 = pl.multiple_of(ci * _SUBCHUNK, _SUBCHUNK)
        x0 = x_ref[0, pl.ds(r0, _SUBCHUNK), :].astype(jnp.float32)  # (16,128)
        x1 = x_ref[1, pl.ds(r0, _SUBCHUNK), :].astype(jnp.float32)

        # LayerNorm over 2 features with the affine folded into fc1:
        # s = x0 - x1 ; n0 = s * rsqrt(s*s + 4*eps)  (== d*rsqrt(d*d+eps))
        s = x0 - x1
        n0 = s * jax.lax.rsqrt(s * s + 4.0 * _EPS)      # EUP rsqrt

        # fc1 (+ folded LN affine) + ReLU + fc2, fused: 3 running accumulators,
        # hidden activations never materialized.
        h0 = jnp.maximum(n0 * a[0] + c[0], 0.0)
        acc0 = h0 * w2[0]
        acc1 = h0 * w2[10]
        acc2 = h0 * w2[20]
        for j in range(1, 10):
            hj = jnp.maximum(n0 * a[j] + c[j], 0.0)
            acc0 = acc0 + hj * w2[j]
            acc1 = acc1 + hj * w2[10 + j]
            acc2 = acc2 + hj * w2[20 + j]

        # Tanh on the EUP; dense (16,128) stores.
        o_ref[0, pl.ds(r0, _SUBCHUNK), :] = jax.lax.tanh(acc0 + b2[0]).astype(o_ref.dtype)
        o_ref[1, pl.ds(r0, _SUBCHUNK), :] = jax.lax.tanh(acc1 + b2[1]).astype(o_ref.dtype)
        o_ref[2, pl.ds(r0, _SUBCHUNK), :] = jax.lax.tanh(acc2 + b2[2]).astype(o_ref.dtype)


def pidnn_forward_packed(xt, params, *, block_rows=None):
    """Packed-layout entry point: xt is (2, R, 128) -> returns (3, R, 128).

    Callers that can keep this layout across surrounding ops avoid the
    pad/transpose HBM passes of `pidnn_forward` entirely.
    """
    gamma, beta, w1, b1, w2, b2 = params
    R = xt.shape[1]
    if block_rows is None:
        block_rows = R
    assert R % block_rows == 0 and block_rows % _SUBCHUNK == 0

    gamma = gamma.astype(jnp.float32)
    beta = beta.astype(jnp.float32)
    w1 = w1.astype(jnp.float32)
    # Fold LayerNorm affine into fc1 (done once in the wrapper, not per step).
    a = gamma[0] * w1[:, 0] - gamma[1] * w1[:, 1]                    # (10,)
    c = beta[0] * w1[:, 0] + beta[1] * w1[:, 1] + b1.astype(jnp.float32)

    smem = pl.BlockSpec(memory_space=pltpu.MemorySpace.SMEM)
    return pl.pallas_call(
        pidnn_kernel,
        out_shape=jax.ShapeDtypeStruct((3, R, _LANES), xt.dtype),
        grid=(R // block_rows,),
        in_specs=[
            pl.BlockSpec((2, block_rows, _LANES), lambda i: (0, i, 0)),
            smem, smem, smem, smem,
        ],
        out_specs=pl.BlockSpec((3, block_rows, _LANES), lambda i: (0, i, 0)),
        compiler_params=pltpu.CompilerParams(
            dimension_semantics=("parallel",)),
    )(
        xt,
        a,
        c,
        w2.reshape(-1).astype(jnp.float32),
        b2.astype(jnp.float32),
    )


def pidnn_forward(x, params, *, max_block_rows=1024, io_dtype=jnp.float32):
    """x: (B, 2) -> (B, 3) float32.  io_dtype=bfloat16 halves HBM bytes
    (arithmetic stays f32 in-kernel); default f32 is bit-faithful."""
    B = x.shape[0]

    # Adaptive block size: at least 2 grid steps (v7x dual-TC), blocks of up
    # to max_block_rows rows, padding waste kept below one block.
    r_needed = max(pl.cdiv(B, _LANES), 1)
    n_steps = max(2, pl.cdiv(r_needed, max_block_rows))
    br = max(_round_up(pl.cdiv(r_needed, n_steps), _SUBCHUNK), _SUBCHUNK)
    R = _round_up(r_needed, br)
    padded = R * _LANES

    # Single fused pad+transpose pass into the packed layout.
    xt = jnp.pad(x.astype(io_dtype), ((0, padded - B), (0, 0))).T
    xt = xt.reshape(2, R, _LANES)

    out = pidnn_forward_packed(xt, params, block_rows=br)
    return out.reshape(3, padded)[:, :B].T.astype(jnp.float32)


def init_params(key):
    """Deterministic init matching the PyTorch module's __init__."""
    k1, k2 = jax.random.split(key, 2)

    # LayerNorm(2): weight=1, bias=0 (PyTorch defaults)
    gamma = jnp.ones((2,), jnp.float32)
    beta = jnp.zeros((2,), jnp.float32)

    # fc1: Linear(2, 10), xavier_uniform weight, bias filled with 0.1
    bound1 = (6.0 / (2 + 10)) ** 0.5
    w1 = jax.random.uniform(k1, (10, 2), jnp.float32, -bound1, bound1)
    b1 = jnp.full((10,), 0.1, jnp.float32)

    # fc2: Linear(10, 3), xavier_uniform weight, bias filled with 0.1
    bound2 = (6.0 / (10 + 3)) ** 0.5
    w2 = jax.random.uniform(k2, (3, 10), jnp.float32, -bound2, bound2)
    b2 = jnp.full((3,), 0.1, jnp.float32)

    return (gamma, beta, w1, b1, w2, b2)


def reference_forward(x, params):
    gamma, beta, w1, b1, w2, b2 = params
    mean = jnp.mean(x, axis=-1, keepdims=True)
    var = jnp.mean((x - mean) ** 2, axis=-1, keepdims=True)
    xn = (x - mean) * jax.lax.rsqrt(var + _EPS) * gamma + beta
    h = jnp.maximum(xn @ w1.T + b1, 0.0)
    return jnp.tanh(h @ w2.T + b2)


if __name__ == "__main__":
    key = jax.random.PRNGKey(0)
    kx, kx2, kp = jax.random.split(key, 3)
    params = init_params(kp)

    # Small shape consistent with the module's (B, 2) input.
    B = 8
    x = jax.random.normal(kx, (B, 2), jnp.float32)
    out = jax.block_until_ready(pidnn_forward(x, params))
    ref = reference_forward(x, params)
    assert out.shape == (B, 3)
    assert jnp.allclose(out, ref, atol=1e-5, rtol=1e-5)

    # Second check exercising a multi-step grid / multi-chunk inner loop.
    B2 = 5000
    x2 = jax.random.normal(kx2, (B2, 2), jnp.float32)
    out2 = jax.block_until_ready(pidnn_forward(x2, params))
    ref2 = reference_forward(x2, params)
    assert out2.shape == (B2, 3)
    assert jnp.allclose(out2, ref2, atol=1e-5, rtol=1e-5)

    print("KERNEL_OK")
</pallas_src>

<mosaic_0001>
module attributes {stable_mosaic.version = 11 : i64} {
  func.func @pidnn_kernel(%arg0: i32, %arg1: memref<2x16x128xf32, #tpu.memory_space<vmem>>, %arg2: memref<10xf32, #tpu.memory_space<smem>>, %arg3: memref<10xf32, #tpu.memory_space<smem>>, %arg4: memref<30xf32, #tpu.memory_space<smem>>, %arg5: memref<3xf32, #tpu.memory_space<smem>>, %arg6: memref<3x16x128xf32, #tpu.memory_space<vmem>>) attributes {dimension_semantics = [#tpu.dimension_semantics<parallel>], iteration_bounds = array<i64: 1>, scalar_prefetch = 0 : i64, scratch_operands = 0 : i64, tpu.core_type = #tpu.core_type<tc>, window_params = [{transform_indices = @transform_0, window_bounds = array<i64: 2, 16, 128>}, {transform_indices = @transform_1, window_bounds = array<i64: 10>}, {transform_indices = @transform_2, window_bounds = array<i64: 10>}, {transform_indices = @transform_3, window_bounds = array<i64: 30>}, {transform_indices = @transform_4, window_bounds = array<i64: 3>}, {transform_indices = @transform_5, window_bounds = array<i64: 3, 16, 128>}]} {
    %c0 = arith.constant 0 : index
    %0 = memref.load %arg2[%c0] : memref<10xf32, #tpu.memory_space<smem>>
    %c1 = arith.constant 1 : index
    %1 = memref.load %arg2[%c1] : memref<10xf32, #tpu.memory_space<smem>>
    %c2 = arith.constant 2 : index
    %2 = memref.load %arg2[%c2] : memref<10xf32, #tpu.memory_space<smem>>
    %c3 = arith.constant 3 : index
    %3 = memref.load %arg2[%c3] : memref<10xf32, #tpu.memory_space<smem>>
    %c4 = arith.constant 4 : index
    %4 = memref.load %arg2[%c4] : memref<10xf32, #tpu.memory_space<smem>>
    %c5 = arith.constant 5 : index
    %5 = memref.load %arg2[%c5] : memref<10xf32, #tpu.memory_space<smem>>
    %c6 = arith.constant 6 : index
    %6 = memref.load %arg2[%c6] : memref<10xf32, #tpu.memory_space<smem>>
    %c7 = arith.constant 7 : index
    %7 = memref.load %arg2[%c7] : memref<10xf32, #tpu.memory_space<smem>>
    %c8 = arith.constant 8 : index
    %8 = memref.load %arg2[%c8] : memref<10xf32, #tpu.memory_space<smem>>
    %c9 = arith.constant 9 : index
    %9 = memref.load %arg2[%c9] : memref<10xf32, #tpu.memory_space<smem>>
    %c0_0 = arith.constant 0 : index
    %10 = memref.load %arg3[%c0_0] : memref<10xf32, #tpu.memory_space<smem>>
    %c1_1 = arith.constant 1 : index
    %11 = memref.load %arg3[%c1_1] : memref<10xf32, #tpu.memory_space<smem>>
    %c2_2 = arith.constant 2 : index
    %12 = memref.load %arg3[%c2_2] : memref<10xf32, #tpu.memory_space<smem>>
    %c3_3 = arith.constant 3 : index
    %13 = memref.load %arg3[%c3_3] : memref<10xf32, #tpu.memory_space<smem>>
    %c4_4 = arith.constant 4 : index
    %14 = memref.load %arg3[%c4_4] : memref<10xf32, #tpu.memory_space<smem>>
    %c5_5 = arith.constant 5 : index
    %15 = memref.load %arg3[%c5_5] : memref<10xf32, #tpu.memory_space<smem>>
    %c6_6 = arith.constant 6 : index
    %16 = memref.load %arg3[%c6_6] : memref<10xf32, #tpu.memory_space<smem>>
    %c7_7 = arith.constant 7 : index
    %17 = memref.load %arg3[%c7_7] : memref<10xf32, #tpu.memory_space<smem>>
    %c8_8 = arith.constant 8 : index
    %18 = memref.load %arg3[%c8_8] : memref<10xf32, #tpu.memory_space<smem>>
    %c9_9 = arith.constant 9 : index
    %19 = memref.load %arg3[%c9_9] : memref<10xf32, #tpu.memory_space<smem>>
    %c0_10 = arith.constant 0 : index
    %20 = memref.load %arg4[%c0_10] : memref<30xf32, #tpu.memory_space<smem>>
    %c1_11 = arith.constant 1 : index
    %21 = memref.load %arg4[%c1_11] : memref<30xf32, #tpu.memory_space<smem>>
    %c2_12 = arith.constant 2 : index
    %22 = memref.load %arg4[%c2_12] : memref<30xf32, #tpu.memory_space<smem>>
    %c3_13 = arith.constant 3 : index
    %23 = memref.load %arg4[%c3_13] : memref<30xf32, #tpu.memory_space<smem>>
    %c4_14 = arith.constant 4 : index
    %24 = memref.load %arg4[%c4_14] : memref<30xf32, #tpu.memory_space<smem>>
    %c5_15 = arith.constant 5 : index
    %25 = memref.load %arg4[%c5_15] : memref<30xf32, #tpu.memory_space<smem>>
    %c6_16 = arith.constant 6 : index
    %26 = memref.load %arg4[%c6_16] : memref<30xf32, #tpu.memory_space<smem>>
    %c7_17 = arith.constant 7 : index
    %27 = memref.load %arg4[%c7_17] : memref<30xf32, #tpu.memory_space<smem>>
    %c8_18 = arith.constant 8 : index
    %28 = memref.load %arg4[%c8_18] : memref<30xf32, #tpu.memory_space<smem>>
    %c9_19 = arith.constant 9 : index
    %29 = memref.load %arg4[%c9_19] : memref<30xf32, #tpu.memory_space<smem>>
    %c10 = arith.constant 10 : index
    %30 = memref.load %arg4[%c10] : memref<30xf32, #tpu.memory_space<smem>>
    %c11 = arith.constant 11 : index
    %31 = memref.load %arg4[%c11] : memref<30xf32, #tpu.memory_space<smem>>
    %c12 = arith.constant 12 : index
    %32 = memref.load %arg4[%c12] : memref<30xf32, #tpu.memory_space<smem>>
    %c13 = arith.constant 13 : index
    %33 = memref.load %arg4[%c13] : memref<30xf32, #tpu.memory_space<smem>>
    %c14 = arith.constant 14 : index
    %34 = memref.load %arg4[%c14] : memref<30xf32, #tpu.memory_space<smem>>
    %c15 = arith.constant 15 : index
    %35 = memref.load %arg4[%c15] : memref<30xf32, #tpu.memory_space<smem>>
    %c16 = arith.constant 16 : index
    %36 = memref.load %arg4[%c16] : memref<30xf32, #tpu.memory_space<smem>>
    %c17 = arith.constant 17 : index
    %37 = memref.load %arg4[%c17] : memref<30xf32, #tpu.memory_space<smem>>
    %c18 = arith.constant 18 : index
    %38 = memref.load %arg4[%c18] : memref<30xf32, #tpu.memory_space<smem>>
    %c19 = arith.constant 19 : index
    %39 = memref.load %arg4[%c19] : memref<30xf32, #tpu.memory_space<smem>>
    %c20 = arith.constant 20 : index
    %40 = memref.load %arg4[%c20] : memref<30xf32, #tpu.memory_space<smem>>
    %c21 = arith.constant 21 : index
    %41 = memref.load %arg4[%c21] : memref<30xf32, #tpu.memory_space<smem>>
    %c22 = arith.constant 22 : index
    %42 = memref.load %arg4[%c22] : memref<30xf32, #tpu.memory_space<smem>>
    %c23 = arith.constant 23 : index
    %43 = memref.load %arg4[%c23] : memref<30xf32, #tpu.memory_space<smem>>
    %c24 = arith.constant 24 : index
    %44 = memref.load %arg4[%c24] : memref<30xf32, #tpu.memory_space<smem>>
    %c25 = arith.constant 25 : index
    %45 = memref.load %arg4[%c25] : memref<30xf32, #tpu.memory_space<smem>>
    %c26 = arith.constant 26 : index
    %46 = memref.load %arg4[%c26] : memref<30xf32, #tpu.memory_space<smem>>
    %c27 = arith.constant 27 : index
    %47 = memref.load %arg4[%c27] : memref<30xf32, #tpu.memory_space<smem>>
    %c28 = arith.constant 28 : index
    %48 = memref.load %arg4[%c28] : memref<30xf32, #tpu.memory_space<smem>>
    %c29 = arith.constant 29 : index
    %49 = memref.load %arg4[%c29] : memref<30xf32, #tpu.memory_space<smem>>
    %c0_20 = arith.constant 0 : index
    %50 = memref.load %arg5[%c0_20] : memref<3xf32, #tpu.memory_space<smem>>
    %c1_21 = arith.constant 1 : index
    %51 = memref.load %arg5[%c1_21] : memref<3xf32, #tpu.memory_space<smem>>
    %c2_22 = arith.constant 2 : index
    %52 = memref.load %arg5[%c2_22] : memref<3xf32, #tpu.memory_space<smem>>
    %c0_i32 = arith.constant 0 : i32
    %c1_i32 = arith.constant 1 : i32
    %53 = arith.muli %c0_i32, %c1_i32 : i32
    %c0_i32_23 = arith.constant 0 : i32
    %54 = arith.addi %c0_i32_23, %53 : i32
    %c16_i32 = arith.constant 16 : i32
    %55 = arith.muli %54, %c16_i32 : i32
    %56 = tpu.assume_multiple %55, 16 : i32
    %c0_24 = arith.constant 0 : index
    %57 = arith.index_cast %56 : i32 to index
    %c0_25 = arith.constant 0 : index
    %58 = vector.load %arg1[%c0_24, %57, %c0_25] : memref<2x16x128xf32, #tpu.memory_space<vmem>>, vector<1x16x128xf32>
    %59 = vector.shape_cast %58 : vector<1x16x128xf32> to vector<16x128xf32>
    %c1_26 = arith.constant 1 : index
    %60 = arith.index_cast %56 : i32 to index
    %c0_27 = arith.constant 0 : index
    %61 = vector.load %arg1[%c1_26, %60, %c0_27] : memref<2x16x128xf32, #tpu.memory_space<vmem>>, vector<1x16x128xf32>
    %62 = vector.shape_cast %61 : vector<1x16x128xf32> to vector<16x128xf32>
    %63 = arith.subf %59, %62 : vector<16x128xf32>
    %64 = arith.mulf %63, %63 : vector<16x128xf32>
    %cst = arith.constant 4.000000e-05 : f32
    %65 = vector.broadcast %cst : f32 to vector<16x128xf32>
    %66 = arith.addf %64, %65 : vector<16x128xf32>
    %67 = math.rsqrt %66 : vector<16x128xf32>
    %68 = arith.mulf %63, %67 : vector<16x128xf32>
    %69 = vector.broadcast %0 : f32 to vector<16x128xf32>
    %70 = arith.mulf %68, %69 : vector<16x128xf32>
    %71 = vector.broadcast %10 : f32 to vector<16x128xf32>
    %72 = arith.addf %70, %71 : vector<16x128xf32>
    %cst_28 = arith.constant 0.000000e+00 : f32
    %73 = vector.broadcast %cst_28 : f32 to vector<16x128xf32>
    %74 = arith.maximumf %72, %73 : vector<16x128xf32>
    %75 = vector.broadcast %20 : f32 to vector<16x128xf32>
    %76 = arith.mulf %74, %75 : vector<16x128xf32>
    %77 = vector.broadcast %30 : f32 to vector<16x128xf32>
    %78 = arith.mulf %74, %77 : vector<16x128xf32>
    %79 = vector.broadcast %40 : f32 to vector<16x128xf32>
    %80 = arith.mulf %74, %79 : vector<16x128xf32>
    %81 = vector.broadcast %1 : f32 to vector<16x128xf32>
    %82 = arith.mulf %68, %81 : vector<16x128xf32>
    %83 = vector.broadcast %11 : f32 to vector<16x128xf32>
    %84 = arith.addf %82, %83 : vector<16x128xf32>
    %cst_29 = arith.constant 0.000000e+00 : f32
    %85 = vector.broadcast %cst_29 : f32 to vector<16x128xf32>
    %86 = arith.maximumf %84, %85 : vector<16x128xf32>
    %87 = vector.broadcast %21 : f32 to vector<16x128xf32>
    %88 = arith.mulf %86, %87 : vector<16x128xf32>
    %89 = arith.addf %76, %88 : vector<16x128xf32>
    %90 = vector.broadcast %31 : f32 to vector<16x128xf32>
    %91 = arith.mulf %86, %90 : vector<16x128xf32>
    %92 = arith.addf %78, %91 : vector<16x128xf32>
    %93 = vector.broadcast %41 : f32 to vector<16x128xf32>
    %94 = arith.mulf %86, %93 : vector<16x128xf32>
    %95 = arith.addf %80, %94 : vector<16x128xf32>
    %96 = vector.broadcast %2 : f32 to vector<16x128xf32>
    %97 = arith.mulf %68, %96 : vector<16x128xf32>
    %98 = vector.broadcast %12 : f32 to vector<16x128xf32>
    %99 = arith.addf %97, %98 : vector<16x128xf32>
    %cst_30 = arith.constant 0.000000e+00 : f32
    %100 = vector.broadcast %cst_30 : f32 to vector<16x128xf32>
    %101 = arith.maximumf %99, %100 : vector<16x128xf32>
    %102 = vector.broadcast %22 : f32 to vector<16x128xf32>
    %103 = arith.mulf %101, %102 : vector<16x128xf32>
    %104 = arith.addf %89, %103 : vector<16x128xf32>
    %105 = vector.broadcast %32 : f32 to vector<16x128xf32>
    %106 = arith.mulf %101, %105 : vector<16x128xf32>
    %107 = arith.addf %92, %106 : vector<16x128xf32>
    %108 = vector.broadcast %42 : f32 to vector<16x128xf32>
    %109 = arith.mulf %101, %108 : vector<16x128xf32>
    %110 = arith.addf %95, %109 : vector<16x128xf32>
    %111 = vector.broadcast %3 : f32 to vector<16x128xf32>
    %112 = arith.mulf %68, %111 : vector<16x128xf32>
    %113 = vector.broadcast %13 : f32 to vector<16x128xf32>
    %114 = arith.addf %112, %113 : vector<16x128xf32>
    %cst_31 = arith.constant 0.000000e+00 : f32
    %115 = vector.broadcast %cst_31 : f32 to vector<16x128xf32>
    %116 = arith.maximumf %114, %115 : vector<16x128xf32>
    %117 = vector.broadcast %23 : f32 to vector<16x128xf32>
    %118 = arith.mulf %116, %117 : vector<16x128xf32>
    %119 = arith.addf %104, %118 : vector<16x128xf32>
    %120 = vector.broadcast %33 : f32 to vector<16x128xf32>
    %121 = arith.mulf %116, %120 : vector<16x128xf32>
    %122 = arith.addf %107, %121 : vector<16x128xf32>
    %123 = vector.broadcast %43 : f32 to vector<16x128xf32>
    %124 = arith.mulf %116, %123 : vector<16x128xf32>
    %125 = arith.addf %110, %124 : vector<16x128xf32>
    %126 = vector.broadcast %4 : f32 to vector<16x128xf32>
    %127 = arith.mulf %68, %126 : vector<16x128xf32>
    %128 = vector.broadcast %14 : f32 to vector<16x128xf32>
    %129 = arith.addf %127, %128 : vector<16x128xf32>
    %cst_32 = arith.constant 0.000000e+00 : f32
    %130 = vector.broadcast %cst_32 : f32 to vector<16x128xf32>
    %131 = arith.maximumf %129, %130 : vector<16x128xf32>
    %132 = vector.broadcast %24 : f32 to vector<16x128xf32>
    %133 = arith.mulf %131, %132 : vector<16x128xf32>
    %134 = arith.addf %119, %133 : vector<16x128xf32>
    %135 = vector.broadcast %34 : f32 to vector<16x128xf32>
    %136 = arith.mulf %131, %135 : vector<16x128xf32>
    %137 = arith.addf %122, %136 : vector<16x128xf32>
    %138 = vector.broadcast %44 : f32 to vector<16x128xf32>
    %139 = arith.mulf %131, %138 : vector<16x128xf32>
    %140 = arith.addf %125, %139 : vector<16x128xf32>
    %141 = vector.broadcast %5 : f32 to vector<16x128xf32>
    %142 = arith.mulf %68, %141 : vector<16x128xf32>
    %143 = vector.broadcast %15 : f32 to vector<16x128xf32>
    %144 = arith.addf %142, %143 : vector<16x128xf32>
    %cst_33 = arith.constant 0.000000e+00 : f32
    %145 = vector.broadcast %cst_33 : f32 to vector<16x128xf32>
    %146 = arith.maximumf %144, %145 : vector<16x128xf32>
    %147 = vector.broadcast %25 : f32 to vector<16x128xf32>
    %148 = arith.mulf %146, %147 : vector<16x128xf32>
    %149 = arith.addf %134, %148 : vector<16x128xf32>
    %150 = vector.broadcast %35 : f32 to vector<16x128xf32>
    %151 = arith.mulf %146, %150 : vector<16x128xf32>
    %152 = arith.addf %137, %151 : vector<16x128xf32>
    %153 = vector.broadcast %45 : f32 to vector<16x128xf32>
    %154 = arith.mulf %146, %153 : vector<16x128xf32>
    %155 = arith.addf %140, %154 : vector<16x128xf32>
    %156 = vector.broadcast %6 : f32 to vector<16x128xf32>
    %157 = arith.mulf %68, %156 : vector<16x128xf32>
    %158 = vector.broadcast %16 : f32 to vector<16x128xf32>
    %159 = arith.addf %157, %158 : vector<16x128xf32>
    %cst_34 = arith.constant 0.000000e+00 : f32
    %160 = vector.broadcast %cst_34 : f32 to vector<16x128xf32>
    %161 = arith.maximumf %159, %160 : vector<16x128xf32>
    %162 = vector.broadcast %26 : f32 to vector<16x128xf32>
    %163 = arith.mulf %161, %162 : vector<16x128xf32>
    %164 = arith.addf %149, %163 : vector<16x128xf32>
    %165 = vector.broadcast %36 : f32 to vector<16x128xf32>
    %166 = arith.mulf %161, %165 : vector<16x128xf32>
    %167 = arith.addf %152, %166 : vector<16x128xf32>
    %168 = vector.broadcast %46 : f32 to vector<16x128xf32>
    %169 = arith.mulf %161, %168 : vector<16x128xf32>
    %170 = arith.addf %155, %169 : vector<16x128xf32>
    %171 = vector.broadcast %7 : f32 to vector<16x128xf32>
    %172 = arith.mulf %68, %171 : vector<16x128xf32>
    %173 = vector.broadcast %17 : f32 to vector<16x128xf32>
    %174 = arith.addf %172, %173 : vector<16x128xf32>
    %cst_35 = arith.constant 0.000000e+00 : f32
    %175 = vector.broadcast %cst_35 : f32 to vector<16x128xf32>
    %176 = arith.maximumf %174, %175 : vector<16x128xf32>
    %177 = vector.broadcast %27 : f32 to vector<16x128xf32>
    %178 = arith.mulf %176, %177 : vector<16x128xf32>
    %179 = arith.addf %164, %178 : vector<16x128xf32>
    %180 = vector.broadcast %37 : f32 to vector<16x128xf32>
    %181 = arith.mulf %176, %180 : vector<16x128xf32>
    %182 = arith.addf %167, %181 : vector<16x128xf32>
    %183 = vector.broadcast %47 : f32 to vector<16x128xf32>
    %184 = arith.mulf %176, %183 : vector<16x128xf32>
    %185 = arith.addf %170, %184 : vector<16x128xf32>
    %186 = vector.broadcast %8 : f32 to vector<16x128xf32>
    %187 = arith.mulf %68, %186 : vector<16x128xf32>
    %188 = vector.broadcast %18 : f32 to vector<16x128xf32>
    %189 = arith.addf %187, %188 : vector<16x128xf32>
    %cst_36 = arith.constant 0.000000e+00 : f32
    %190 = vector.broadcast %cst_36 : f32 to vector<16x128xf32>
    %191 = arith.maximumf %189, %190 : vector<16x128xf32>
    %192 = vector.broadcast %28 : f32 to vector<16x128xf32>
    %193 = arith.mulf %191, %192 : vector<16x128xf32>
    %194 = arith.addf %179, %193 : vector<16x128xf32>
    %195 = vector.broadcast %38 : f32 to vector<16x128xf32>
    %196 = arith.mulf %191, %195 : vector<16x128xf32>
    %197 = arith.addf %182, %196 : vector<16x128xf32>
    %198 = vector.broadcast %48 : f32 to vector<16x128xf32>
    %199 = arith.mulf %191, %198 : vector<16x128xf32>
    %200 = arith.addf %185, %199 : vector<16x128xf32>
    %201 = vector.broadcast %9 : f32 to vector<16x128xf32>
    %202 = arith.mulf %68, %201 : vector<16x128xf32>
    %203 = vector.broadcast %19 : f32 to vector<16x128xf32>
    %204 = arith.addf %202, %203 : vector<16x128xf32>
    %cst_37 = arith.constant 0.000000e+00 : f32
    %205 = vector.broadcast %cst_37 : f32 to vector<16x128xf32>
    %206 = arith.maximumf %204, %205 : vector<16x128xf32>
    %207 = vector.broadcast %29 : f32 to vector<16x128xf32>
    %208 = arith.mulf %206, %207 : vector<16x128xf32>
    %209 = arith.addf %194, %208 : vector<16x128xf32>
    %210 = vector.broadcast %39 : f32 to vector<16x128xf32>
    %211 = arith.mulf %206, %210 : vector<16x128xf32>
    %212 = arith.addf %197, %211 : vector<16x128xf32>
    %213 = vector.broadcast %49 : f32 to vector<16x128xf32>
    %214 = arith.mulf %206, %213 : vector<16x128xf32>
    %215 = arith.addf %200, %214 : vector<16x128xf32>
    %216 = vector.broadcast %50 : f32 to vector<16x128xf32>
    %217 = arith.addf %209, %216 : vector<16x128xf32>
    %218 = math.tanh %217 : vector<16x128xf32>
    %c0_38 = arith.constant 0 : index
    %219 = arith.index_cast %56 : i32 to index
    %c0_39 = arith.constant 0 : index
    %220 = vector.load %arg6[%c0_38, %219, %c0_39] : memref<3x16x128xf32, #tpu.memory_space<vmem>>, vector<1x16x128xf32>
    %221 = vector.shape_cast %220 : vector<1x16x128xf32> to vector<16x128xf32>
    %222 = vector.shape_cast %218 : vector<16x128xf32> to vector<1x16x128xf32>
    tpu.vector_store %arg6[%c0_38, %219, %c0_39], %222 {strides = array<i32>} : memref<3x16x128xf32, #tpu.memory_space<vmem>>, vector<1x16x128xf32>,
    %223 = vector.broadcast %51 : f32 to vector<16x128xf32>
    %224 = arith.addf %212, %223 : vector<16x128xf32>
    %225 = math.tanh %224 : vector<16x128xf32>
    %c1_40 = arith.constant 1 : index
    %226 = arith.index_cast %56 : i32 to index
    %c0_41 = arith.constant 0 : index
    %227 = vector.load %arg6[%c1_40, %226, %c0_41] : memref<3x16x128xf32, #tpu.memory_space<vmem>>, vector<1x16x128xf32>
    %228 = vector.shape_cast %227 : vector<1x16x128xf32> to vector<16x128xf32>
    %229 = vector.shape_cast %225 : vector<16x128xf32> to vector<1x16x128xf32>
    tpu.vector_store %arg6[%c1_40, %226, %c0_41], %229 {strides = array<i32>} : memref<3x16x128xf32, #tpu.memory_space<vmem>>, vector<1x16x128xf32>,
    %230 = vector.broadcast %52 : f32 to vector<16x128xf32>
    %231 = arith.addf %215, %230 : vector<16x128xf32>
    %232 = math.tanh %231 : vector<16x128xf32>
    %c2_42 = arith.constant 2 : index
    %233 = arith.index_cast %56 : i32 to index
    %c0_43 = arith.constant 0 : index
    %234 = vector.load %arg6[%c2_42, %233, %c0_43] : memref<3x16x128xf32, #tpu.memory_space<vmem>>, vector<1x16x128xf32>
    %235 = vector.shape_cast %234 : vector<1x16x128xf32> to vector<16x128xf32>
    %236 = vector.shape_cast %232 : vector<16x128xf32> to vector<1x16x128xf32>
    tpu.vector_store %arg6[%c2_42, %233, %c0_43], %236 {strides = array<i32>} : memref<3x16x128xf32, #tpu.memory_space<vmem>>, vector<1x16x128xf32>,
    %c1_i32_44 = arith.constant 1 : i32
    return
  }
  func.func @transform_0(%arg0: i32) -> (i32, i32, i32) {
    %c0_i32 = arith.constant 0 : i32
    %c0_i32_0 = arith.constant 0 : i32
    %c0_i32_1 = arith.constant 0 : i32
    return %c0_i32, %arg0, %c0_i32_0 : i32, i32, i32
  }
  func.func @transform_1(%arg0: i32) -> i32 {
    %c0_i32 = arith.constant 0 : i32
    %c0_i32_0 = arith.constant 0 : i32
    return %c0_i32 : i32
  }
  func.func @transform_2(%arg0: i32) -> i32 {
    %c0_i32 = arith.constant 0 : i32
    %c0_i32_0 = arith.constant 0 : i32
    return %c0_i32 : i32
  }
  func.func @transform_3(%arg0: i32) -> i32 {
    %c0_i32 = arith.constant 0 : i32
    %c0_i32_0 = arith.constant 0 : i32
    return %c0_i32 : i32
  }
  func.func @transform_4(%arg0: i32) -> i32 {
    %c0_i32 = arith.constant 0 : i32
    %c0_i32_0 = arith.constant 0 : i32
    return %c0_i32 : i32
  }
  func.func @transform_5(%arg0: i32) -> (i32, i32, i32) {
    %c0_i32 = arith.constant 0 : i32
    %c0_i32_0 = arith.constant 0 : i32
    %c0_i32_1 = arith.constant 0 : i32
    return %c0_i32, %arg0, %c0_i32_0 : i32, i32, i32
  }
}

</mosaic_0001>

<bundles_post_ra>
// kernel: tpu_custom_call.1
= control target key start
LH: loop header
LB: loop body
LE: loop exit
PB: predicated region body
PF: predicated region fallthrough
CT: control target
= control target key end

     0   :  { %10 = vsyncpa [#allocation3], 0  ;;  %s1113_s0 = inlined_call_operand.hbm [shape: f32[2,16,128], index: 0, kind: input, shape index: {}]   ;;  %s1114_s1 = inlined_call_operand.hbm [shape: f32[10], index: 1, kind: input, shape index: {}]   ;;  %s1115_s2 = inlined_call_operand.vmem [shape: f32[10], index: 2, kind: input, shape index: {}]   ;;  %s1116_s3 = inlined_call_operand.vmem [shape: f32[30], index: 3, kind: input, shape index: {}]   ;;  %s1117_s4 = inlined_call_operand.vmem [shape: f32[3], index: 4, kind: input, shape index: {}]   ;;  %s1118_s5 = inlined_call_operand.hbm [shape: f32[3,16,128], index: 5, kind: output, shape index: {}]  }
   0x1   :  { %11 = vsyncpa [#allocation5], 0 }
   0x2   :  { %12 = vsyncpa [#allocation6], 0 }
   0x3   :  { %13 = vsyncpa [#allocation10], 0  ;;  %s51_s20 = sshll.u32 %s1116_s3, 4  ;;  %s52_s20 = int_to_ptr.vmem [resolvable:$true] %s51_s20 }
   0x4   :  { %14 = vsyncpa [#allocation4], 0  ;;  %s19_s23 = sshll.u32 %s1113_s0, 4  ;;  %s624_s24 = smov [#allocation9]   ;;  %s20_s23 = int_to_ptr.hbm [resolvable:$true] %s19_s23 }
   0x5   :  { %54 = dma.vmem_to_smem %s52_s20, 16, %s624_s24, [#allocation10]  }
   0x6   :  { %s625_s25 = smov [#allocation2]   ;;  %s1119_s27 = smov 128  }
   0x7   :  { %s21_s26 = sshll.u32 %s625_s25, 4  ;;  %s1120_s28 = smov 8   ;;  %s22_s26 = int_to_ptr.vmem [resolvable:$true] %s21_s26 }
   0x8   :  { %27 = dma.hbm_to_vmem [thread:$0]  %s20_s23, 512, %s22_s26, [#allocation3], %s1119_s27, %s1119_s27, %s1120_s28  }
   0x9   :  { %s33_s30 = sshll.u32 %s1114_s1, 4  ;;  %s42_s0 = sshll.u32 %s1115_s2, 4  ;;  %s34_s30 = int_to_ptr.hbm [resolvable:$true] %s33_s30  ;;  %s43_s0 = int_to_ptr.vmem [resolvable:$true] %s42_s0 }
   0xa   :  { %s628_s8 = smov [#allocation7]   ;;  %s629_s9 = smov [#allocation8]  }
   0xb   :  { %36 = dma.hbm_to_smem %s34_s30, 16, %s628_s8, [#allocation5]  }
   0xc   :  { %45 = dma.vmem_to_smem %s43_s0, 16, %s629_s9, [#allocation6]  }
   0xd   :  { %s60_s12 = sshll.u32 %s1117_s4, 4  ;;  %s630_s13 = smov [#allocation11]   ;;  %s61_s12 = int_to_ptr.vmem [resolvable:$true] %s60_s12 }
   0xe   :  { %63 = dma.vmem_to_smem %s61_s12, 16, %s630_s13, [#allocation10]  }
   0xf   :  { %614 = dma.done.wait [#allocation3], 512  }
  0x10   :  { %615 = vsyncadd [#allocation3], 4294966784 }
  0x11   :  { %616 = dma.done.wait [#allocation5], 16  }
  0x12   :  { %617 = vsyncadd [#allocation5], 4294967280 }
  0x13   :  { %618 = dma.done.wait [#allocation6], 16  }
  0x14   :  { %619 = vsyncadd [#allocation6], 4294967280 }
  0x15   :  { %620 = dma.done.wait [#allocation10], 32  }
  0x16   :  { %621 = vsyncadd [#allocation10], 4294967264 }
  0x17   :  { %84 = sfence }
  0x18   :  { %s680_s1 = sld [smem:[#allocation7]]  ;;  %v138_v0 = vld [vmem:[#allocation2] sm:$0xff]  ;;  %v142_v1 = vld [vmem:[#allocation2 + $0x10] sm:$0xff]  ;;  %v139_v2 = vld [vmem:[#allocation2 + $0x8] sm:$0xff] }
  0x19   :  { %s682_s2 = sld [smem:[#allocation7 + $0x1]]  ;;  %v684_v3 = vsub.f32 %v138_v0, %v142_v1  ;;  %v143_v4 = vld [vmem:[#allocation2 + $0x18] sm:$0xff] }
  0x1a   :  { %s686_s4 = sld [smem:[#allocation7 + $0x2]]  ;;  %v688_v5 = vsub.f32 %v139_v2, %v143_v4 }
  0x1b   :  { %s690_s14 = sld [smem:[#allocation7 + $0x3]]  ;;  %v146_v6 = vmul.f32 %v684_v3, %v684_v3 }
  0x1c   :  { %s694_s15 = sld [smem:[#allocation7 + $0x4]]  ;;  %v147_v7 = vmul.f32 %v688_v5, %v688_v5 }
  0x1d   :  { %s698_s16 = sld [smem:[#allocation7 + $0x5]]  ;;  %v148_v8 = vadd.f32 4e-05, %v146_v6 }
  0x1e   :  { %s700_s17 = sld [smem:[#allocation7 + $0x6]]  ;;  %v149_v9 = vadd.f32 4e-05, %v147_v7  ;;  %v172_v17 = vstv %s680_s1 }
  0x1f   :  { %s702_s18 = sld [smem:[#allocation7 + $0x7]]  ;;  %502 = vrsqrt.f32 %v148_v8  ;;  %vm156_vm0 = vweird.f32 %v148_v8  ;;  %v189_v18 = vstv %s682_s2 }
  0x20   :  { %s704_s19 = sld [smem:[#allocation7 + $0x8]]  ;;  %504 = vrsqrt.f32 %v149_v9  ;;  %v212_v21 = vstv %s686_s4  ;;  %vm166_vm2 = vweird.f32 %v149_v9 }
  0x21   :  { %s706_s20 = sld [smem:[#allocation7 + $0x9]]  ;;  %v235_v23 = vstv %s690_s14 }
  0x22   :  { %s708_s21 = sld [smem:[#allocation8]]  ;;  %v258_v24 = vstv %s694_s15 }
  0x23   :  { %s710_s22 = sld [smem:[#allocation8 + $0x1]]  ;;  %v281_v25 = vstv %s698_s16 }
  0x24   :  { %s712_s23 = sld [smem:[#allocation8 + $0x2]]  ;;  %v304_v28 = vstv %s700_s17 }
  0x25   :  { %v503_v10 = vpop.eup %502  ;;  %s714_s24 = sld [smem:[#allocation8 + $0x3]]  ;;  %v327_v29 = vstv %s702_s18 }
  0x26   :  { %v716_v11 = vpop.eup %504  ;;  %s718_s25 = sld [smem:[#allocation8 + $0x4]]  ;;  %v151_v12 = vmul.f32 %v503_v10, %v148_v8  ;;  %vm157_vm1 = vweird.f32 %v503_v10  ;;  %v350_v30 = vstv %s704_s19 }
  0x27   :  { %s720_s26 = sld [smem:[#allocation8 + $0x5]]  ;;  %v161_v13 = vmul.f32 %v716_v11, %v149_v9  ;;  %vm167_vm3 = vweird.f32 %v716_v11  ;;  %vm740_vm4 = vmor %vm156_vm0, %vm157_vm1  ;;  %v373_v33 = vstv %s706_s20 }
  0x28   :  { %s723_s29 = sld [smem:[#allocation8 + $0x6]]  ;;  %v152_v14 = vmul.f32 %v503_v10, %v151_v12  ;;  %v175_v31 = vstv %s708_s21  ;;  %vm761_vm5 = vmor %vm166_vm2, %vm167_vm3 }
  0x29   :  { %s725_s3 = sld [smem:[#allocation8 + $0x7]]  ;;  %v162_v15 = vmul.f32 %v716_v11, %v161_v13  ;;  %v192_v32 = vstv %s710_s22 }
  0x2a   :  { %s728_s30 = sld [smem:[#allocation8 + $0x8]]  ;;  %v153_v16 = vmul.f32 0.5, %v152_v14  ;;  %v215_v37 = vstv %s712_s23 }
  0x2b   :  { %s730_s6 = sld [smem:[#allocation8 + $0x9]]  ;;  %v163_v19 = vmul.f32 0.5, %v162_v15  ;;  %v238_v38 = vstv %s714_s24 }
  0x2c   :  { %s734_s7 = sld [smem:[#allocation9]]  ;;  %v154_v20 = vsub.f32 1.5, %v153_v16  ;;  %v261_v39 = vstv %s718_s25 }
  0x2d   :  { %s738_s0 = sld [smem:[#allocation9 + $0x1]]  ;;  %v164_v26 = vsub.f32 1.5, %v163_v19  ;;  %v284_v41 = vstv %s720_s26 }
  0x2e   :  { %s747_s8 = sld [smem:[#allocation9 + $0x2]]  ;;  %v155_v27 = vmul.f32 %v503_v10, %v154_v20  ;;  %v307_v42 = vstv %s723_s29 }
  0x2f   :  { %s752_s9 = sld [smem:[#allocation9 + $0x3]]  ;;  %v165_v34 = vmul.f32 %v716_v11, %v164_v26  ;;  %v330_v43 = vstv %s725_s3 }
  0x30   :  { %s765_s10 = sld [smem:[#allocation9 + $0x4]]  ;;  %v159_v36 = vsel %vm740_vm4, %v503_v10, %v155_v27  ;;  %v353_v45 = vstv %s728_s30 }
  0x31   :  { %s772_s11 = sld [smem:[#allocation9 + $0x5]]  ;;  %v170_v40 = vmul.f32 %v159_v36, %v684_v3  ;;  %v376_v46 = vstv %s730_s6  ;;  %v169_v47 = vsel %vm761_vm5, %v716_v11, %v165_v34 }
  0x32   :  { %s778_s12 = sld [smem:[#allocation9 + $0x6]]  ;;  %v180_v44 = vstv %s734_s7  ;;  %v845_v12 = vmul.f32 %v169_v47, %v688_v5 }
  0x33   :  { %s786_s13 = sld [smem:[#allocation9 + $0x7]]  ;;  %v173_v48 = vmul.f32 %v172_v17, %v170_v40  ;;  %v190_v49 = vmul.f32 %v189_v18, %v170_v40  ;;  %v197_v50 = vstv %s738_s0  ;;  %v213_v51 = vmul.f32 %v212_v21, %v170_v40  ;;  %s631_s0 = smov [#allocation12]  }
  0x34   :  { %s795_s27 = sld [smem:[#allocation9 + $0x8]]  ;;  %v220_v52 = vstv %s747_s8  ;;  %v236_v53 = vmul.f32 %v235_v23, %v170_v40  ;;  %v259_v54 = vmul.f32 %v258_v24, %v170_v40  ;;  %v282_v55 = vmul.f32 %v281_v25, %v170_v40  ;;  %s424_s8 = sshll.u32 %s631_s0, 4  ;;  %s425_s8 = int_to_ptr.vmem [resolvable:$true] %s424_s8 }
  0x35   :  { %s804_s28 = sld [smem:[#allocation9 + $0x9]]  ;;  %v176_v56 = vadd.f32 %v175_v31, %v173_v48  ;;  %v193_v57 = vadd.f32 %v192_v32, %v190_v49  ;;  %v216_v58 = vadd.f32 %v215_v37, %v213_v51  ;;  %v243_v59 = vstv %s752_s9 }
  0x36   :  { %v239_v60 = vadd.f32 %v238_v38, %v236_v53  ;;  %v262_v61 = vadd.f32 %v261_v39, %v259_v54  ;;  %v266_v62 = vstv %s765_s10  ;;  %v285_v63 = vadd.f32 %v284_v41, %v282_v55  ;;  %s901_s1 = sld [smem:[#allocation11]] }
  0x37   :  { %v820_v0 = vmax.f32 %v176_v56, 0.0  ;;  %v822_v1 = vmax.f32 %v193_v57, 0.0  ;;  %v824_v2 = vmax.f32 %v216_v58, 0.0  ;;  %v289_v3 = vstv %s772_s11  ;;  %s920_s2 = sld [smem:[#allocation9 + $0xa]]  ;;  %s426_s11 = sshll.u32 %s1118_s5, 4  ;;  %s427_s11 = int_to_ptr.hbm [resolvable:$true] %s426_s11 }
  0x38   :  { %v827_v4 = vmax.f32 %v239_v60, 0.0  ;;  %v829_v6 = vmax.f32 %v262_v61, 0.0  ;;  %v831_v7 = vmax.f32 %v285_v63, 0.0  ;;  %v305_v8 = vmul.f32 %v304_v28, %v170_v40  ;;  %s930_s4 = sld [smem:[#allocation9 + $0xb]] }
  0x39   :  { %v181_v9 = vmul.f32 %v180_v44, %v820_v0  ;;  %v198_v10 = vmul.f32 %v197_v50, %v822_v1  ;;  %v221_v11 = vmul.f32 %v220_v52, %v824_v2  ;;  %v312_v16 = vstv %s778_s12  ;;  %s943_s14 = sld [smem:[#allocation9 + $0xc]]  ;;  %s1125_s12 = smov 8  }
  0x3a   :  { %v244_v13 = vmul.f32 %v243_v59, %v827_v4  ;;  %v267_v14 = vmul.f32 %v266_v62, %v829_v6  ;;  %v308_v15 = vadd.f32 %v307_v42, %v305_v8  ;;  %v290_v20 = vmul.f32 %v289_v3, %v831_v7  ;;  %s952_s15 = sld [smem:[#allocation9 + $0xd]] }
  0x3b   :  { %v200_v19 = vadd.f32 %v198_v10, %v181_v9  ;;  %v328_v5 = vmul.f32 %v327_v29, %v170_v40  ;;  %v351_v22 = vmul.f32 %v350_v30, %v170_v40  ;;  %v335_v27 = vstv %s786_s13  ;;  %s962_s16 = sld [smem:[#allocation9 + $0xe]]  ;;  %s1126_s13 = smov 128  }
  0x3c   :  { %v863_v26 = vmax.f32 %v308_v15, 0.0  ;;  %v358_v34 = vstv %s795_s27  ;;  %v374_v35 = vmul.f32 %v373_v33, %v170_v40  ;;  %v381_v49 = vstv %s804_s28  ;;  %s971_s17 = sld [smem:[#allocation9 + $0xf]] }
  0x3d   :  { %v223_v36 = vadd.f32 %v221_v11, %v200_v19  ;;  %v331_v47 = vadd.f32 %v330_v43, %v328_v5  ;;  %v354_v48 = vadd.f32 %v353_v45, %v351_v22  ;;  %v174_v54 = vmul.f32 %v172_v17, %v845_v12  ;;  %s980_s18 = sld [smem:[#allocation9 + $0x10]] }
  0x3e   :  { %v313_v51 = vmul.f32 %v312_v16, %v863_v26  ;;  %v377_v53 = vadd.f32 %v376_v46, %v374_v35  ;;  %v191_v40 = vmul.f32 %v189_v18, %v845_v12  ;;  %v214_v58 = vmul.f32 %v212_v21, %v845_v12  ;;  %s988_s19 = sld [smem:[#allocation9 + $0x11]] }
  0x3f   :  { %v246_v55 = vadd.f32 %v244_v13, %v223_v36  ;;  %v885_v56 = vmax.f32 %v331_v47, 0.0  ;;  %v887_v57 = vmax.f32 %v354_v48, 0.0  ;;  %v177_v61 = vadd.f32 %v175_v31, %v174_v54  ;;  %s997_s20 = sld [smem:[#allocation9 + $0x12]] }
  0x40   :  { %v892_v60 = vmax.f32 %v377_v53, 0.0  ;;  %v194_v17 = vadd.f32 %v192_v32, %v191_v40  ;;  %v237_v18 = vmul.f32 %v235_v23, %v845_v12  ;;  %v217_v31 = vadd.f32 %v215_v37, %v214_v58  ;;  %s999_s21 = sld [smem:[#allocation9 + $0x13]] }
  0x41   :  { %v269_v63 = vadd.f32 %v267_v14, %v246_v55  ;;  %v336_v8 = vmul.f32 %v335_v27, %v885_v56  ;;  %v359_v21 = vmul.f32 %v358_v34, %v887_v57  ;;  %v914_v9 = vmax.f32 %v177_v61, 0.0  ;;  %s1020_s22 = sld [smem:[#allocation9 + $0x14]] }
  0x42   :  { %v382_v32 = vmul.f32 %v381_v49, %v892_v60  ;;  %v916_v23 = vmax.f32 %v194_v17, 0.0  ;;  %v240_v10 = vadd.f32 %v238_v38, %v237_v18  ;;  %v922_v13 = vmax.f32 %v217_v31, 0.0  ;;  %s1024_s23 = sld [smem:[#allocation9 + $0x15]] }
  0x43   :  { %v292_v11 = vadd.f32 %v290_v20, %v269_v63  ;;  %v260_v37 = vmul.f32 %v258_v24, %v845_v12  ;;  %v283_v14 = vmul.f32 %v281_v25, %v845_v12  ;;  %v182_v15 = vmul.f32 %v180_v44, %v914_v9  ;;  %s1030_s24 = sld [smem:[#allocation9 + $0x16]] }
  0x44   :  { %v199_v38 = vmul.f32 %v197_v50, %v916_v23  ;;  %v938_v19 = vmax.f32 %v240_v10, 0.0  ;;  %v306_v20 = vmul.f32 %v304_v28, %v845_v12  ;;  %v222_v25 = vmul.f32 %v220_v52, %v922_v13  ;;  %s1033_s25 = sld [smem:[#allocation9 + $0x17]] }
  0x45   :  { %v315_v24 = vadd.f32 %v313_v51, %v292_v11  ;;  %v263_v5 = vadd.f32 %v261_v39, %v260_v37  ;;  %v286_v44 = vadd.f32 %v284_v41, %v283_v14  ;;  %v329_v52 = vmul.f32 %v327_v29, %v845_v12  ;;  %s1043_s27 = sld [smem:[#allocation9 + $0x18]] }
  0x46   :  { %v201_v50 = vadd.f32 %v199_v38, %v182_v15  ;;  %v245_v22 = vmul.f32 %v243_v59, %v938_v19  ;;  %v309_v28 = vadd.f32 %v307_v42, %v306_v20  ;;  %v352_v36 = vmul.f32 %v350_v30, %v845_v12  ;;  %s1048_s26 = sld [smem:[#allocation9 + $0x19]] }
  0x47   :  { %v338_v39 = vadd.f32 %v336_v8, %v315_v24  ;;  %v964_v35 = vmax.f32 %v263_v5, 0.0  ;;  %v966_v41 = vmax.f32 %v286_v44, 0.0  ;;  %v332_v29 = vadd.f32 %v330_v43, %v329_v52  ;;  %s1050_s28 = sld [smem:[#allocation11 + $0x1]] }
  0x48   :  { %v224_v59 = vadd.f32 %v222_v25, %v201_v50  ;;  %v973_v42 = vmax.f32 %v309_v28, 0.0  ;;  %v375_v47 = vmul.f32 %v373_v33, %v845_v12  ;;  %v396_v51 = vstv %s901_s1  ;;  %s1056_s29 = sld [smem:[#allocation9 + $0x1a]] }
  0x49   :  { %v361_v48 = vadd.f32 %v359_v21, %v338_v39  ;;  %v268_v30 = vmul.f32 %v266_v62, %v964_v35  ;;  %v355_v53 = vadd.f32 %v353_v45, %v352_v36  ;;  %v291_v43 = vmul.f32 %v289_v3, %v966_v41  ;;  %s1063_s3 = sld [smem:[#allocation9 + $0x1b]] }
  0x4a   :  { %v247_v54 = vadd.f32 %v245_v22, %v224_v59  ;;  %v993_v33 = vmax.f32 %v332_v29, 0.0  ;;  %v378_v12 = vadd.f32 %v376_v46, %v375_v47  ;;  %v183_v62 = vstv %s920_s2  ;;  %s1071_s30 = sld [smem:[#allocation9 + $0x1c]] }
  0x4b   :  { %v384_v40 = vadd.f32 %v382_v32, %v361_v48  ;;  %v202_v45 = vstv %s930_s4  ;;  %v314_v58 = vmul.f32 %v312_v16, %v973_v42  ;;  %v1006_v61 = vmax.f32 %v355_v53, 0.0  ;;  %s1077_s6 = sld [smem:[#allocation9 + $0x1d]] }
  0x4c   :  { %v270_v55 = vadd.f32 %v268_v30, %v247_v54  ;;  %v184_v3 = vmul.f32 %v183_v62, %v820_v0  ;;  %v337_v17 = vmul.f32 %v335_v27, %v993_v33  ;;  %v203_v18 = vmul.f32 %v202_v45, %v822_v1  ;;  %s1092_s7 = sld [smem:[#allocation11 + $0x2]] }
  0x4d   :  { %v397_v46 = vadd.f32 %v396_v51, %v384_v40  ;;  %v225_v63 = vstv %s943_s14  ;;  %v1016_v21 = vmax.f32 %v378_v12, 0.0  ;;  %v248_v16 = vstv %s952_s15 }
  0x4e   :  { %v293_v8 = vadd.f32 %v291_v43, %v270_v55  ;;  %v226_v31 = vmul.f32 %v225_v63, %v824_v2  ;;  %v205_v32 = vadd.f32 %v203_v18, %v184_v3  ;;  %v249_v10 = vmul.f32 %v248_v16, %v827_v4 }
  0x4f   :  { %506 = vtanh.f32 %v397_v46  ;;  %v271_v27 = vstv %s962_s16  ;;  %v360_v37 = vmul.f32 %v358_v34, %v1006_v61  ;;  %v294_v14 = vstv %s971_s17 }
  0x50   :  { %v316_v11 = vadd.f32 %v314_v58, %v293_v8  ;;  %v228_v15 = vadd.f32 %v226_v31, %v205_v32  ;;  %v272_v38 = vmul.f32 %v271_v27, %v829_v6  ;;  %v383_v24 = vmul.f32 %v381_v49, %v1016_v21 }
  0x51   :  { %v317_v25 = vstv %s980_s18  ;;  %v340_v5 = vstv %s988_s19  ;;  %v295_v50 = vmul.f32 %v294_v14, %v831_v7  ;;  %v363_v22 = vstv %s997_s20 }
  0x52   :  { %v339_v20 = vadd.f32 %v337_v17, %v316_v11  ;;  %v251_v44 = vadd.f32 %v249_v10, %v228_v15  ;;  %v386_v28 = vstv %s999_s21  ;;  %v185_v52 = vmul.f32 %v183_v62, %v914_v9 }
  0x53   :  { %v204_v39 = vmul.f32 %v202_v45, %v916_v23  ;;  %v227_v36 = vmul.f32 %v225_v63, %v922_v13  ;;  %v318_v29 = vmul.f32 %v317_v25, %v863_v26  ;;  %v341_v47 = vmul.f32 %v340_v5, %v885_v56 }
  0x54   :  { %v362_v34 = vadd.f32 %v360_v37, %v339_v20  ;;  %v274_v59 = vadd.f32 %v272_v38, %v251_v44  ;;  %v364_v30 = vmul.f32 %v363_v22, %v887_v57  ;;  %v250_v54 = vmul.f32 %v248_v16, %v938_v19 }
  0x55   :  { %v507_v49 = vpop.eup %506  ;;  %v206_v53 = vadd.f32 %v204_v39, %v185_v52  ;;  %v387_v12 = vmul.f32 %v386_v28, %v892_v60  ;;  %v273_v40 = vmul.f32 %v271_v27, %v964_v35  ;;  %v186_v62 = vstv %s1020_s22 }
  0x56   :  { %401 = vst [vmem:[#allocation12] sm:$0xff] %v507_v49  ;;  %v385_v48 = vadd.f32 %v383_v24, %v362_v34  ;;  %v297_v43 = vadd.f32 %v295_v50, %v274_v59  ;;  %v187_v58 = vmul.f32 %v186_v62, %v820_v0  ;;  %v207_v3 = vstv %s1024_s23 }
  0x57   :  { %v229_v55 = vadd.f32 %v227_v36, %v206_v53  ;;  %v208_v17 = vmul.f32 %v207_v3, %v822_v1  ;;  %v230_v18 = vstv %s1030_s24  ;;  %v253_v63 = vstv %s1033_s25 }
  0x58   :  { %v398_v45 = vadd.f32 %v396_v51, %v385_v48  ;;  %v320_v46 = vadd.f32 %v318_v29, %v297_v43  ;;  %v296_v31 = vmul.f32 %v294_v14, %v966_v41  ;;  %v231_v51 = vmul.f32 %v230_v18, %v824_v2 }
  0x59   :  { %v252_v8 = vadd.f32 %v250_v54, %v229_v55  ;;  %v210_v32 = vadd.f32 %v208_v17, %v187_v58  ;;  %v254_v0 = vmul.f32 %v253_v63, %v827_v4  ;;  %v276_v10 = vstv %s1043_s27 }
  0x5a   :  { %508 = vtanh.f32 %v398_v45  ;;  %v343_v16 = vadd.f32 %v341_v47, %v320_v46  ;;  %v319_v1 = vmul.f32 %v317_v25, %v973_v42  ;;  %v299_v11 = vstv %s1048_s26 }
  0x5b   :  { %v275_v27 = vadd.f32 %v273_v40, %v252_v8  ;;  %v403_v15 = vstv %s1050_s28  ;;  %v233_v14 = vadd.f32 %v231_v51, %v210_v32  ;;  %v277_v38 = vmul.f32 %v276_v10, %v829_v6 }
  0x5c   :  { %v366_v37 = vadd.f32 %v364_v30, %v343_v16  ;;  %v342_v2 = vmul.f32 %v340_v5, %v993_v33  ;;  %v365_v24 = vmul.f32 %v363_v22, %v1006_v61  ;;  %v322_v44 = vstv %s1056_s29 }
  0x5d   :  { %v298_v20 = vadd.f32 %v296_v31, %v275_v27  ;;  %v388_v50 = vmul.f32 %v386_v28, %v1016_v21  ;;  %v256_v25 = vadd.f32 %v254_v0, %v233_v14  ;;  %v300_v34 = vmul.f32 %v299_v11, %v831_v7 }
  0x5e   :  { %v389_v4 = vadd.f32 %v387_v12, %v366_v37  ;;  %v345_v36 = vstv %s1063_s3  ;;  %v188_v49 = vmul.f32 %v186_v62, %v914_v9  ;;  %v209_v6 = vmul.f32 %v207_v3, %v916_v23 }
  0x5f   :  { %v321_v39 = vadd.f32 %v319_v1, %v298_v20  ;;  %v279_v59 = vadd.f32 %v277_v38, %v256_v25  ;;  %v323_v22 = vmul.f32 %v322_v44, %v863_v26  ;;  %v232_v29 = vmul.f32 %v230_v18, %v922_v13 }
  0x60   :  { %v509_v52 = vpop.eup %508  ;;  %v404_v5 = vadd.f32 %v403_v15, %v389_v4  ;;  %v368_v28 = vstv %s1071_s30  ;;  %v211_v7 = vadd.f32 %v209_v6, %v188_v49  ;;  %v255_v48 = vmul.f32 %v253_v63, %v938_v19 }
  0x61   :  { %402 = vst [vmem:[#allocation12 + $0x8] sm:$0xff] %v509_v52  ;;  %v344_v47 = vadd.f32 %v342_v2, %v321_v39  ;;  %v302_v30 = vadd.f32 %v300_v34, %v279_v59  ;;  %v346_v9 = vmul.f32 %v345_v36, %v885_v56  ;;  %v391_v23 = vstv %s1077_s6 }
  0x62   :  { %510 = vtanh.f32 %v404_v5  ;;  %v234_v54 = vadd.f32 %v232_v29, %v211_v7  ;;  %v278_v43 = vmul.f32 %v276_v10, %v964_v35  ;;  %v369_v13 = vmul.f32 %v368_v28, %v887_v57 }
  0x63   :  { %v367_v53 = vadd.f32 %v365_v24, %v344_v47  ;;  %v325_v26 = vadd.f32 %v323_v22, %v302_v30  ;;  %v301_v62 = vmul.f32 %v299_v11, %v966_v41  ;;  %v392_v19 = vmul.f32 %v391_v23, %v892_v60 }
  0x64   :  { %v257_v40 = vadd.f32 %v255_v48, %v234_v54  ;;  %v324_v56 = vmul.f32 %v322_v44, %v973_v42  ;;  %v411_v17 = vstv %s1092_s7  ;;  %v347_v18 = vmul.f32 %v345_v36, %v993_v33 }
  0x65   :  { %v390_v12 = vadd.f32 %v388_v50, %v367_v53  ;;  %v348_v45 = vadd.f32 %v346_v9, %v325_v26  ;;  %v370_v8 = vmul.f32 %v368_v28, %v1006_v61  ;;  %v393_v60 = vmul.f32 %v391_v23, %v1016_v21 }
  0x66   :  { %v280_v58 = vadd.f32 %v278_v43, %v257_v40 }
  0x67   :  { %v405_v55 = vadd.f32 %v403_v15, %v390_v12  ;;  %v371_v46 = vadd.f32 %v369_v13, %v348_v45 }
  0x68   :  { %v511_v3 = vpop.eup %510  ;;  %v303_v35 = vadd.f32 %v301_v62, %v280_v58 }
  0x69   :  { %409 = vst [vmem:[#allocation12 + $0x10] sm:$0xff] %v511_v3  ;;  %512 = vtanh.f32 %v405_v55  ;;  %v394_v57 = vadd.f32 %v392_v19, %v371_v46 }
  0x6a   :  { %v326_v63 = vadd.f32 %v324_v56, %v303_v35 }
  0x6b   :  { %v412_v41 = vadd.f32 %v411_v17, %v394_v57 }
  0x6c   :  { %v349_v31 = vadd.f32 %v347_v18, %v326_v63 }
  0x6d   :  { %514 = vtanh.f32 %v412_v41 }
  0x6e   :  { %v372_v16 = vadd.f32 %v370_v8, %v349_v31 }
  0x6f   :  { %v513_v51 = vpop.eup %512 }
  0x70   :  { %410 = vst [vmem:[#allocation12 + $0x18] sm:$0xff] %v513_v51  ;;  %v395_v42 = vadd.f32 %v393_v60, %v372_v16 }
  0x72   :  { %v413_v32 = vadd.f32 %v411_v17, %v395_v42 }
  0x73   :  { %v515_v0 = vpop.eup %514 }
  0x74   :  { %418 = vst [vmem:[#allocation12 + $0x20] sm:$0xff] %v515_v0  ;;  %516 = vtanh.f32 %v413_v32 }
  0x7a   :  { %v517_v33 = vpop.eup %516 }
  0x7b   :  { %419 = vst [vmem:[#allocation12 + $0x28] sm:$0xff] %v517_v33 }
  0x7c   :  { %432 = dma.vmem_to_hbm [thread:$0]  %s425_s8, 768, %s427_s11, [#allocation4], %s1126_s13, %s1126_s13, %s1125_s12  }
  0x7d   :  { %622 = dma.done.wait [#allocation4], 768  }
  0x7e   :  { %623 = vsyncadd [#allocation4], 4294966528 }
  0x7f   :  { %437 = vsyncpa [#allocation3], 1 }
  0x80   :  { %438 = vsyncpa [#allocation4], 1 }
  0x81   :  { %439 = vsyncpa [#allocation5], 1 }
  0x82   :  { %440 = vsyncpa [#allocation6], 1 }
  0x83   :  { %441 = vsyncpa [#allocation10], 1 }

</bundles_post_ra>
